<compile_context>
chip_gen: v6e
topology: v6e:2x2x1
jax: 0.10.0
libtpu: 0.0.40
codegen_flags: <defaults>
</compile_context>

<pallas_src>
import jax
import jax.numpy as jnp
from jax.experimental import pallas as pl
from jax.experimental.pallas import tpu as pltpu

INPUT_DIM = 2
HIDDEN_DIM = 10
OUTPUT_DIM = 1
_LANES = 128  # padded parameter / output lane width (one vreg wide)

# Parameter-slab row layout (sublane index in the packed (8, 128) slab).
_ROW_W1_0 = 0   # w1[0, :]  weights for input feature 0
_ROW_W1_1 = 1   # w1[1, :]  weights for input feature 1
_ROW_B1 = 2     # b1
_ROW_W2 = 3     # w2[:, 0]  (second layer weights, transposed)
_ROW_B2 = 4     # b2 (lane 0)


def _mlp_kernel(x_ref, p_ref, o_ref):
    # x_ref: (B, INPUT_DIM) f32, p_ref: (8, 128) f32 packed params,
    # o_ref: (B, 128) f32 lane-dense output slab (result in every lane).
    x0 = x_ref[:, 0:1]                           # (B, 1)
    x1 = x_ref[:, 1:2]                           # (B, 1)
    w1_r0 = p_ref[_ROW_W1_0:_ROW_W1_0 + 1, :]    # (1, 128), zero-padded
    w1_r1 = p_ref[_ROW_W1_1:_ROW_W1_1 + 1, :]    # (1, 128)
    b1 = p_ref[_ROW_B1:_ROW_B1 + 1, :]           # (1, 128)
    w2 = p_ref[_ROW_W2:_ROW_W2 + 1, :]           # (1, 128)
    b2 = p_ref[_ROW_B2:_ROW_B2 + 1, :][:, 0:1]   # (1, 1) (slice in-register)

    # Layer 1: two broadcast FMAs with the bias folded in (pure VPU).
    h = x0 * w1_r0 + x1 * w1_r1 + b1             # (B, 128); lanes >= HIDDEN are 0
    h = jnp.maximum(h, 0.0)                      # ReLU (padded lanes stay 0)

    # Layer 2: VPU multiply + XLU lane reduction; padded lanes contribute 0.
    z = jnp.sum(h * w2, axis=-1, keepdims=True)  # (B, 1)
    s = jax.nn.sigmoid(z + b2)                   # (B, 1), EUP

    # Lane-dense (unmasked) store: splat result across the 128 lanes.
    o_ref[...] = jnp.broadcast_to(s, o_ref.shape).astype(o_ref.dtype)


def _pack_params(w1, b1, w2, b2):
    """Pack (w1:(in,hid), b1:(hid,), w2:(hid,out), b2:(out,)) into one
    zero-padded (8, 128) f32 slab -> a single parameter DMA."""
    assert w1.shape == (INPUT_DIM, HIDDEN_DIM)
    assert b1.shape == (HIDDEN_DIM,)
    assert w2.shape == (HIDDEN_DIM, OUTPUT_DIM)
    assert b2.shape == (OUTPUT_DIM,)
    slab = jnp.zeros((8, _LANES), jnp.float32)
    slab = slab.at[_ROW_W1_0, :HIDDEN_DIM].set(w1[0, :].astype(jnp.float32))
    slab = slab.at[_ROW_W1_1, :HIDDEN_DIM].set(w1[1, :].astype(jnp.float32))
    slab = slab.at[_ROW_B1, :HIDDEN_DIM].set(b1.astype(jnp.float32))
    slab = slab.at[_ROW_W2, :HIDDEN_DIM].set(w2[:, 0].astype(jnp.float32))
    slab = slab.at[_ROW_B2, 0].set(b2[0].astype(jnp.float32))
    return slab


@jax.jit
def mlp_forward(x, w1, b1, w2, b2):
    """x: (B, 2) f32; w1: (2, 10); b1: (10,); w2: (10, 1); b2: (1,).
    Returns (B, 1) f32 == sigmoid(relu(x @ w1 + b1) @ w2 + b2)."""
    assert x.shape[1] == INPUT_DIM
    B = x.shape[0]
    params = _pack_params(w1, b1, w2, b2)

    # Whole problem is a single VMEM tile: full-array BlockSpecs, no grid.
    # (If B ever grows past a few thousand rows, add a grid over batch with
    # dimension_semantics=("parallel",) so v7x shards it across its 2 TCs.)
    vm = pl.BlockSpec(memory_space=pltpu.VMEM)
    out_slab = pl.pallas_call(
        _mlp_kernel,
        out_shape=jax.ShapeDtypeStruct((B, _LANES), jnp.float32),
        in_specs=[vm, vm],
        out_specs=vm,
    )(x.astype(jnp.float32), params)
    return out_slab[:, :OUTPUT_DIM]


def _reference(x, w1, b1, w2, b2):
    h = jnp.maximum(x @ w1 + b1, 0.0)
    return jax.nn.sigmoid(h @ w2 + b2)


if __name__ == "__main__":
    key = jax.random.PRNGKey(0)
    kx, k1, k2, k3, k4 = jax.random.split(key, 5)

    # Deterministic parameter init (uniform, PyTorch-Linear-like fan_in bound).
    bound1 = 1.0 / float(jnp.sqrt(float(INPUT_DIM)))
    bound2 = 1.0 / float(jnp.sqrt(float(HIDDEN_DIM)))
    w1 = jax.random.uniform(k1, (INPUT_DIM, HIDDEN_DIM), jnp.float32, -bound1, bound1)
    b1 = jax.random.uniform(k2, (HIDDEN_DIM,), jnp.float32, -bound1, bound1)
    w2 = jax.random.uniform(k3, (HIDDEN_DIM, OUTPUT_DIM), jnp.float32, -bound2, bound2)
    b2 = jax.random.uniform(k4, (OUTPUT_DIM,), jnp.float32, -bound2, bound2)

    # Small batch (module-native scale) and a larger batch to show the
    # per-call overhead amortization path — same single-tile kernel.
    for batch in (8, 256):
        x = jax.random.normal(kx, (batch, INPUT_DIM), dtype=jnp.float32)
        out = jax.block_until_ready(mlp_forward(x, w1, b1, w2, b2))
        ref = jax.block_until_ready(_reference(x, w1, b1, w2, b2))
        assert out.shape == (batch, OUTPUT_DIM), out.shape
        assert jnp.allclose(out, ref, atol=1e-5, rtol=1e-5), (out, ref)

    print("KERNEL_OK")
</pallas_src>

<mosaic_0001>
module attributes {stable_mosaic.version = 11 : i64} {
  func.func @_mlp_kernel(%arg0: memref<8x2xf32, #tpu.memory_space<vmem>>, %arg1: memref<8x128xf32, #tpu.memory_space<vmem>>, %arg2: memref<8x128xf32, #tpu.memory_space<vmem>>) attributes {dimension_semantics = [], scalar_prefetch = 0 : i64, scratch_operands = 0 : i64, tpu.core_type = #tpu.core_type<tc>} {
    %c0 = arith.constant 0 : index
    %c0_0 = arith.constant 0 : index
    %0 = vector.load %arg0[%c0, %c0_0] : memref<8x2xf32, #tpu.memory_space<vmem>>, vector<8x1xf32>
    %c0_1 = arith.constant 0 : index
    %c1 = arith.constant 1 : index
    %1 = vector.load %arg0[%c0_1, %c1] : memref<8x2xf32, #tpu.memory_space<vmem>>, vector<8x1xf32>
    %c0_2 = arith.constant 0 : index
    %c0_3 = arith.constant 0 : index
    %2 = vector.load %arg1[%c0_2, %c0_3] : memref<8x128xf32, #tpu.memory_space<vmem>>, vector<1x128xf32>
    %c1_4 = arith.constant 1 : index
    %c0_5 = arith.constant 0 : index
    %3 = vector.load %arg1[%c1_4, %c0_5] : memref<8x128xf32, #tpu.memory_space<vmem>>, vector<1x128xf32>
    %c2 = arith.constant 2 : index
    %c0_6 = arith.constant 0 : index
    %4 = vector.load %arg1[%c2, %c0_6] : memref<8x128xf32, #tpu.memory_space<vmem>>, vector<1x128xf32>
    %c3 = arith.constant 3 : index
    %c0_7 = arith.constant 0 : index
    %5 = vector.load %arg1[%c3, %c0_7] : memref<8x128xf32, #tpu.memory_space<vmem>>, vector<1x128xf32>
    %c4 = arith.constant 4 : index
    %c0_8 = arith.constant 0 : index
    %6 = vector.load %arg1[%c4, %c0_8] : memref<8x128xf32, #tpu.memory_space<vmem>>, vector<1x128xf32>
    %7 = vector.extract_strided_slice %6 {offsets = [0, 0], sizes = [1, 1], strides = [1, 1]} : vector<1x128xf32> to vector<1x1xf32>
    %8 = vector.broadcast %0 : vector<8x1xf32> to vector<8x128xf32>
    %9 = vector.broadcast %2 : vector<1x128xf32> to vector<8x128xf32>
    %10 = arith.mulf %8, %9 : vector<8x128xf32>
    %11 = vector.broadcast %1 : vector<8x1xf32> to vector<8x128xf32>
    %12 = vector.broadcast %3 : vector<1x128xf32> to vector<8x128xf32>
    %13 = arith.mulf %11, %12 : vector<8x128xf32>
    %14 = arith.addf %10, %13 : vector<8x128xf32>
    %15 = vector.broadcast %4 : vector<1x128xf32> to vector<8x128xf32>
    %16 = arith.addf %14, %15 : vector<8x128xf32>
    %cst = arith.constant 0.000000e+00 : f32
    %17 = vector.broadcast %cst : f32 to vector<8x128xf32>
    %18 = arith.maximumf %16, %17 : vector<8x128xf32>
    %19 = vector.broadcast %5 : vector<1x128xf32> to vector<8x128xf32>
    %20 = arith.mulf %18, %19 : vector<8x128xf32>
    %cst_9 = arith.constant dense<0.000000e+00> : vector<8xf32>
    %21 = vector.multi_reduction <add>, %20, %cst_9 [1] : vector<8x128xf32> to vector<8xf32>
    %22 = vector.shape_cast %21 : vector<8xf32> to vector<8x1xf32>
    %23 = vector.broadcast %7 : vector<1x1xf32> to vector<8x1xf32>
    %24 = arith.addf %22, %23 : vector<8x1xf32>
    %25 = arith.negf %24 : vector<8x1xf32>
    %26 = math.exp %25 : vector<8x1xf32>
    %cst_10 = arith.constant 1.000000e+00 : f32
    %27 = vector.broadcast %cst_10 : f32 to vector<8x1xf32>
    %28 = arith.addf %27, %26 : vector<8x1xf32>
    %29 = arith.divf %27, %28 : vector<8x1xf32>
    %30 = vector.shape_cast %29 : vector<8x1xf32> to vector<8x1xf32>
    %31 = vector.broadcast %30 : vector<8x1xf32> to vector<8x128xf32>
    %c0_11 = arith.constant 0 : index
    %c0_12 = arith.constant 0 : index
    %32 = vector.load %arg2[%c0_11, %c0_12] : memref<8x128xf32, #tpu.memory_space<vmem>>, vector<8x128xf32>
    tpu.vector_store %arg2[%c0_11, %c0_12], %31 {strides = array<i32>} : memref<8x128xf32, #tpu.memory_space<vmem>>, vector<8x128xf32>,
    return
  }
}

</mosaic_0001>

<bundles_post_ra>
// kernel: mlp_forward.1
= control target key start
LH: loop header
LB: loop body
LE: loop exit
PB: predicated region body
PF: predicated region fallthrough
CT: control target
= control target key end

     0   :  { %v87_v0 = vmov 0   ;;  %v88_v2 = vmov 1   ;;  %s125_s0 = inlined_call_operand.vmem [shape: f32[8,2], index: 0, kind: input, shape index: {}]   ;;  %s126_s1 = inlined_call_operand.vmem [shape: f32[8,128], index: 1, kind: input, shape index: {}]   ;;  %s127_s2 = inlined_call_operand.vmem [shape: f32[8,128], index: 2, kind: output, shape index: {}]  }
   0x1   :  { %79 = vset.pattern.permute.xlu0 %v87_v0  ;;  %v11_v1 = vld [vmem:[%s125_s0] sm:$0xff]  ;;  %81 = vset.pattern.permute.xlu1 %v87_v0 }
   0x2   :  { %19 = vperm.xlu0 %79, %v11_v1   ;;  %v71_v4 = vld [vmem:[%s126_s1] ss:$0 sm:$0xff]  ;;  %v72_v5 = vld [vmem:[%s126_s1 + $0x1] ss:$0 sm:$0xff]  ;;  %v73_v9 = vld [vmem:[%s126_s1 + $0x2] ss:$0 sm:$0xff] }
   0x3   :  { %v74_v12 = vld [vmem:[%s126_s1 + $0x3] ss:$0 sm:$0xff]  ;;  %v75_v15 = vld [vmem:[%s126_s1 + $0x4] ss:$0 sm:$0xff] }
   0x6   :  { %80 = vset.pattern.permute.xlu0 %v88_v2 }
   0x7   :  { %28 = vperm.xlu0 %80, %v11_v1  }
   0xb   :  { %82 = vset.pattern.permute.xlu0 %v87_v0 }
  0x7d   :  { %v20_v3 = vpop.permute.xlu0 %19 }
  0x7e   :  { %v26_v7 = vmul.f32 %v71_v4, %v20_v3 }
  0x82   :  { %v29_v6 = vpop.permute.xlu0 %28 }
  0x83   :  { %v35_v8 = vmul.f32 %v72_v5, %v29_v6 }
  0x85   :  { %v36_v10 = vadd.f32 %v35_v8, %v26_v7 }
  0x87   :  { %v41_v11 = vadd.f32 %v73_v9, %v36_v10 }
  0x89   :  { %v42_v13 = vmax.f32 %v41_v11, 0.0 }
  0x8b   :  { %v47_v14 = vmul.f32 %v74_v12, %v42_v13 }
  0x8d   :  { %48 = vadd.xlane.f32.xlu1 %v47_v14 }
 0x116   :  { %v49_v16 = vpop.xlane.xlu1 %48 }
 0x117   :  { %v54_v17 = vadd.f32 %v75_v15, %v49_v16 }
 0x119   :  { %v76_v18 = vmul.f32 -1.442695, %v54_v17 }
 0x11b   :  { %83 = vpow2.f32 %v76_v18 }
 0x128   :  { %v84_v19 = vpop.eup %83 }
 0x129   :  { %v58_v20 = vadd.f32 1.0, %v84_v19 }
 0x12b   :  { %85 = vrcp.f32 %v58_v20 }
 0x138   :  { %v86_v21 = vpop.eup %85 }
 0x139   :  { %63 = vperm.xlu1 %81, %v86_v21  }
 0x1b4   :  { %v64_v22 = vpop.permute.xlu1 %63 }
 0x1b5   :  { %66 = vst [vmem:[%s127_s2] sm:$0xff] %v64_v22 }

</bundles_post_ra>
